<compile_context>
chip_gen: v7x
topology: tpu7x:2x2x1
jax: 0.10.0
libtpu: 0.0.40
codegen_flags: <defaults>
</compile_context>

<pallas_src>
import jax
import jax.numpy as jnp
from jax.experimental import pallas as pl
from jax.experimental.pallas import tpu as pltpu

LN_EPS = 1e-5          # PyTorch nn.LayerNorm default
NPAD = 128             # lane-dense classifier width (real logits live in columns [:2])
N_CLASSES = 2


def _round_up(x, m):
    return ((x + m - 1) // m) * m


# ----------------------------- Pallas kernel ------------------------------ #
def _make_fusion_kernel(split, hd, hd2, hd_pad, hd2_pad):
    """Fused Linear -> LN -> ReLU -> Linear -> LN -> ReLU -> Linear(classifier).

    split=True  kernel refs: (v, a, w1v, w1a, w2, wc, prows, out)
    split=False kernel refs: (x,        w1,  w2, wc, prows, out)
      v/a/x : (TB, ·) activation tile (f32 for split path, bf16 for concat path)
      w*    : bf16 weights, output dims zero-padded to (hd_pad, hd2_pad, NPAD)
      prows : (8, PW) f32 slab; rows 0..2 = b1/g1/bt1 (width hd_pad),
              rows 3..5 = b2/g2/bt2 (width hd2_pad), row 6 = bc (width NPAD)
      out   : (TB, NPAD) bf16 lane-dense logits (real logits in columns [:2])
    Matmuls: bf16 operands, f32 accumulation (MXU native). LN/ReLU in f32.
    Dropout layers are identity (eval mode).
    """

    def _layer_norm(h, gamma, beta, width_true, width_pad):
        # Centered two-pass form (numerically stable); (h - mu) is computed once and reused
        # for both the variance and the normalization (saves a full-tile VPU pass).
        if width_pad != width_true:
            # Padded lanes of h are exactly zero (zero-padded weights/biases), so plain sums
            # are safe for the mean, but the centered term must be masked out of the variance
            # and the divisor must be the TRUE width (not the padded one).
            inv_n = 1.0 / width_true
            mu = jnp.sum(h, axis=-1, keepdims=True) * inv_n
            c = h - mu
            lane = jax.lax.broadcasted_iota(jnp.int32, (1, width_pad), 1)
            var = jnp.sum(jnp.where(lane < width_true, c * c, 0.0),
                          axis=-1, keepdims=True) * inv_n
        else:
            mu = jnp.mean(h, axis=-1, keepdims=True)
            c = h - mu
            var = jnp.mean(c * c, axis=-1, keepdims=True)
        # gamma/beta are zero in padded lanes -> padded outputs stay exactly zero for the
        # next matmul, keeping the padded math identical to the unpadded reference.
        return c * (jax.lax.rsqrt(var + LN_EPS) * gamma) + beta

    def kernel(*refs):
        if split:
            v_ref, a_ref, w1v_ref, w1a_ref, w2_ref, wc_ref, p_ref, out_ref = refs
        else:
            x_ref, w1_ref, w2_ref, wc_ref, p_ref, out_ref = refs

        bf = jnp.bfloat16
        p = p_ref[...]                                           # (8, PW) f32
        b1, g1, bt1 = p[0:1, :hd_pad], p[1:2, :hd_pad], p[2:3, :hd_pad]
        b2, g2, bt2 = p[3:4, :hd2_pad], p[4:5, :hd2_pad], p[5:6, :hd2_pad]
        bc = p[6:7, :out_ref.shape[1]]

        # --- Linear(H_comb -> Hd): torch.cat([v, a], 1) @ W1 ---
        if split:
            # f32 tiles cast to bf16 on-chip (cheap VPU pack) -> no wrapper-side HBM cast pass
            h1 = (jnp.dot(v_ref[...].astype(bf), w1v_ref[...],
                          preferred_element_type=jnp.float32)
                  + jnp.dot(a_ref[...].astype(bf), w1a_ref[...],
                            preferred_element_type=jnp.float32)
                  + b1)
        else:
            h1 = jnp.dot(x_ref[...], w1_ref[...], preferred_element_type=jnp.float32) + b1
        h1 = jnp.maximum(_layer_norm(h1, g1, bt1, hd, hd_pad), 0.0)

        # --- Linear(Hd -> Hd2) + LayerNorm + ReLU ---
        h2 = jnp.dot(h1.astype(bf), w2_ref[...], preferred_element_type=jnp.float32) + b2
        h2 = jnp.maximum(_layer_norm(h2, g2, bt2, hd2, hd2_pad), 0.0)

        # --- classifier Linear(Hd2 -> NPAD); padded columns are zero; lane-dense bf16 store ---
        logits = jnp.dot(h2.astype(bf), wc_ref[...], preferred_element_type=jnp.float32) + bc
        out_ref[...] = logits.astype(out_ref.dtype)

    return kernel


def fusion_mlp_pallas(v, a, kparams, *, batch_tile=None):
    """v: (B, H_v) f32, a: (B, H_a) f32; kparams from pack_params().

    Returns the (B, NPAD) bf16 padded logit slab; real logits are columns [:N_CLASSES]
    (slice + f32 upcast belong in the jit-ed downstream consumer so they fuse)."""
    dims = kparams["dims"]
    B = v.shape[0]
    H_v, H_a = dims["H_v"], dims["H_a"]
    Hd, Hd2 = dims["Hd"], dims["Hd2"]
    Hd_p, Hd2_p = dims["Hd_p"], dims["Hd2_p"]
    H_comb = H_v + H_a
    split = kparams["split"]
    w2, wc, prows = kparams["w2"], kparams["wc"], kparams["prows"]

    # Batch tile: <=512 rows per step, even number of grid steps when possible so both v7x
    # TensorCores get work under dimension_semantics=("parallel",); 16-row aligned for bf16.
    if batch_tile is None:
        target = 512
        n_tiles = 2 * max(1, -(-B // (2 * target)))
        batch_tile = -(-B // n_tiles)
    TB = _round_up(max(1, min(batch_tile, B)), 16)
    grid = (pl.cdiv(B, TB),)

    def _resident(shape):
        # Constant index_map -> block never changes across the grid; single-buffer it so
        # double-buffering doesn't double the resident-weight VMEM footprint.
        return pl.BlockSpec(shape, lambda i: (0, 0), pipeline_mode=pl.Buffered(1))

    weight_bytes = (H_comb * Hd_p + Hd_p * Hd2_p + Hd2_p * NPAD) * 2 + prows.size * 4

    if split:
        # f32 activations straight into the kernel (cast on-chip) -> no extra HBM cast pass.
        operands = (v, a, kparams["w1v"], kparams["w1a"], w2, wc, prows)
        in_specs = [
            pl.BlockSpec((TB, H_v), lambda i: (i, 0)),     # activation tiles: pipelined
            pl.BlockSpec((TB, H_a), lambda i: (i, 0)),
            _resident((H_v, Hd_p)),                        # weights/params: resident, 1-buffered
            _resident((H_a, Hd_p)),
            _resident((Hd_p, Hd2_p)),
            _resident((Hd2_p, NPAD)),
            _resident(prows.shape),
        ]
        act_row_bytes = H_comb * 4
        act_hbm_bytes = B * H_comb * 4
    else:
        # Small / non-128-aligned widths: one lane-dense combined operand + single W1 matmul
        # (halves MXU pushes + DMA descriptors for layer 1). The bf16 cast fuses into the one
        # unavoidable concat copy, so kernel-side reads are 2 B/elem with no extra HBM pass.
        x = jnp.concatenate([v.astype(jnp.bfloat16), a.astype(jnp.bfloat16)], axis=1)
        operands = (x, kparams["w1"], w2, wc, prows)
        in_specs = [
            pl.BlockSpec((TB, H_comb), lambda i: (i, 0)),
            _resident((H_comb, Hd_p)),
            _resident((Hd_p, Hd2_p)),
            _resident((Hd2_p, NPAD)),
            _resident(prows.shape),
        ]
        act_row_bytes = H_comb * 2
        act_hbm_bytes = B * H_comb * 2

    # Explicit scoped-VMEM budget: double-buffered activation/output tiles + single-buffered
    # weights + f32 intermediates (h1/h2) and their bf16 casts, with ~2x headroom; clamped to
    # [32 MiB, 64 MiB] so it is safe on v5e (16 MiB default) and within v7x physical VMEM.
    vmem_need = (2 * TB * act_row_bytes
                 + 2 * TB * NPAD * 2
                 + weight_bytes
                 + TB * (H_comb + Hd_p + Hd2_p) * 6)
    vmem_limit = int(min(max(2 * vmem_need, 32 << 20), 64 << 20))

    cost = pl.CostEstimate(
        flops=2 * B * (H_comb * Hd_p + Hd_p * Hd2_p + Hd2_p * NPAD),
        transcendentals=2 * B,                       # one rsqrt per row per LayerNorm
        bytes_accessed=act_hbm_bytes + weight_bytes + B * NPAD * 2,
    )

    kernel = _make_fusion_kernel(split, Hd, Hd2, Hd_p, Hd2_p)

    out = pl.pallas_call(
        kernel,
        out_shape=jax.ShapeDtypeStruct((B, NPAD), jnp.bfloat16),   # bf16 halves writeback
        grid=grid,
        in_specs=in_specs,
        out_specs=pl.BlockSpec((TB, NPAD), lambda i: (i, 0)),
        compiler_params=pltpu.CompilerParams(
            dimension_semantics=("parallel",),       # v7x: shard batch tiles across 2 TCs
            vmem_limit_bytes=vmem_limit,
        ),
        cost_estimate=cost,
    )(*operands)
    return out


# --------------------- deterministic parameter creation -------------------- #
def make_params(key, H_v, H_a):
    """f32 'master' params (PyTorch-equivalent layout, W stored as [fan_in, fan_out])."""
    H_comb = H_v + H_a
    Hd = H_comb // 2
    Hd2 = Hd // 2
    ks = jax.random.split(key, 5)

    def lin(k, fan_in, fan_out):
        bound = 1.0 / jnp.sqrt(fan_in)
        kw, kb = jax.random.split(k)
        w = jax.random.uniform(kw, (fan_in, fan_out), jnp.float32, -bound, bound)
        b = jax.random.uniform(kb, (1, fan_out), jnp.float32, -bound, bound)
        return w, b

    w1, b1 = lin(ks[0], H_comb, Hd)
    w2, b2 = lin(ks[1], Hd, Hd2)
    wc, bc = lin(ks[2], Hd2, N_CLASSES)
    master = dict(
        w1=w1, b1=b1,
        g1=jnp.ones((1, Hd), jnp.float32), bt1=jnp.zeros((1, Hd), jnp.float32),
        w2=w2, b2=b2,
        g2=jnp.ones((1, Hd2), jnp.float32), bt2=jnp.zeros((1, Hd2), jnp.float32),
        wc=wc, bc=bc,
    )
    # backbone stub projections (plain-JAX glue; external models not translatable)
    stub = dict(
        wv=jax.random.normal(ks[3], (3 * 16 * 16, H_v), jnp.float32) * 0.02,
        wa=jax.random.normal(ks[4], (8 * 16, H_a), jnp.float32) * 0.02,
    )
    return master, stub


def pack_params(master, H_v, H_a):
    """Master f32 params -> kernel-ready operands:
       * hidden/output weight dims zero-padded to 128-multiples (full vreg/MXU occupancy),
       * matmul weights in bf16 (MXU-native, halves weight DMA bytes),
       * classifier zero-padded to a lane-dense 128-wide output,
       * the seven (1, F) rows packed into one (8, PW) f32 slab (single DMA descriptor),
       * W1 split along its input axis only when H_v/H_a are 128-aligned (no HBM concat)."""
    Hd = master["w1"].shape[1]
    Hd2 = master["w2"].shape[1]
    Hd_p = _round_up(Hd, 128)
    Hd2_p = _round_up(Hd2, 128)
    PW = max(Hd_p, NPAD)
    split = (H_v % 128 == 0) and (H_a % 128 == 0)

    w1_p = (jnp.zeros((H_v + H_a, Hd_p), jnp.float32)
            .at[:, :Hd].set(master["w1"]).astype(jnp.bfloat16))
    w2_p = (jnp.zeros((Hd_p, Hd2_p), jnp.float32)
            .at[:Hd, :Hd2].set(master["w2"]).astype(jnp.bfloat16))
    wc_p = (jnp.zeros((Hd2_p, NPAD), jnp.float32)
            .at[:Hd2, :N_CLASSES].set(master["wc"]).astype(jnp.bfloat16))

    prows = jnp.zeros((8, PW), jnp.float32)
    prows = prows.at[0, :Hd].set(master["b1"][0])
    prows = prows.at[1, :Hd].set(master["g1"][0])
    prows = prows.at[2, :Hd].set(master["bt1"][0])
    prows = prows.at[3, :Hd2].set(master["b2"][0])
    prows = prows.at[4, :Hd2].set(master["g2"][0])
    prows = prows.at[5, :Hd2].set(master["bt2"][0])
    prows = prows.at[6, :N_CLASSES].set(master["bc"][0])

    kp = dict(w2=w2_p, wc=wc_p, prows=prows, split=split,
              dims=dict(H_v=H_v, H_a=H_a, Hd=Hd, Hd2=Hd2, Hd_p=Hd_p, Hd2_p=Hd2_p))
    if split:
        kp["w1v"] = w1_p[:H_v]
        kp["w1a"] = w1_p[H_v:]
    else:
        kp["w1"] = w1_p
    return kp


# ------------------------------ backbone stubs ----------------------------- #
# TODO(synk): the real HuggingFace video_model / audio_model backbones are external modules
# with no in-script equivalent; they are replaced by deterministic JAX stubs that produce
# v = hidden_states[-1][:, 0, :] and a = audio_model(audio_inputs).
def video_backbone_cls_stub(video_inputs, wv, seq_len=5):
    """CLS token of hidden_states[-1] only (avoids materializing the (B, S, H_v) tensor)."""
    B = video_inputs.shape[0]
    tokens = video_inputs.reshape(B, -1) @ wv            # (B, H_v)
    return tokens * (1.0 / seq_len)                      # == hidden_states[-1][:, 0, :]


def audio_backbone_stub(audio_inputs, wa):
    B = audio_inputs.shape[0]
    return jnp.tanh(audio_inputs.reshape(B, -1) @ wa)    # (B, H_a)


# ------------------------------ full forward -------------------------------- #
def multimodal_lie_detector_v2(video_inputs, audio_inputs, kparams, stub):
    v = video_backbone_cls_stub(video_inputs, stub["wv"])    # (B, H_v)   CLS token
    a = audio_backbone_stub(audio_inputs, stub["wa"])        # (B, H_a)
    padded = fusion_mlp_pallas(v, a, kparams)                # (B, NPAD) bf16 -- Pallas hot path
    # slice + upcast in the (jit-ed) consumer so XLA fuses it with downstream ops
    return padded[:, :N_CLASSES].astype(jnp.float32)


# --------------------------------- references -------------------------------- #
def _ln(x, g, b):
    mu = jnp.mean(x, axis=-1, keepdims=True)
    var = jnp.mean((x - mu) ** 2, axis=-1, keepdims=True)
    return (x - mu) * jax.lax.rsqrt(var + LN_EPS) * g + b


def _ref_forward_f32(v, a, p):
    """Pure-f32 ground truth mirroring the PyTorch eval-mode forward."""
    x = jnp.concatenate([v, a], axis=1)
    h1 = jnp.maximum(_ln(x @ p["w1"] + p["b1"], p["g1"], p["bt1"]), 0.0)
    h2 = jnp.maximum(_ln(h1 @ p["w2"] + p["b2"], p["g2"], p["bt2"]), 0.0)
    return h2 @ p["wc"] + p["bc"]


def _ref_forward_bf16(v, a, p, H_v):
    """Mirrors the kernel's numerics: bf16 MXU operands, f32 accumulation, f32 LN/ReLU."""
    bf = jnp.bfloat16
    h1 = (jnp.dot(v.astype(bf), p["w1"][:H_v].astype(bf), preferred_element_type=jnp.float32)
          + jnp.dot(a.astype(bf), p["w1"][H_v:].astype(bf), preferred_element_type=jnp.float32)
          + p["b1"])
    h1 = jnp.maximum(_ln(h1, p["g1"], p["bt1"]), 0.0)
    h2 = jnp.dot(h1.astype(bf), p["w2"].astype(bf), preferred_element_type=jnp.float32) + p["b2"]
    h2 = jnp.maximum(_ln(h2, p["g2"], p["bt2"]), 0.0)
    return jnp.dot(h2.astype(bf), p["wc"].astype(bf), preferred_element_type=jnp.float32) + p["bc"]


if __name__ == "__main__":
    def build_and_check(key, B, H_v, H_a):
        k_in, k_par = jax.random.split(key)
        kv, ka = jax.random.split(k_in)
        video_inputs = jax.random.normal(kv, (B, 3, 16, 16), jnp.float32)   # NCHW frames
        audio_inputs = jax.random.normal(ka, (B, 8, 16), jnp.float32)

        master, stub = make_params(k_par, H_v, H_a)
        kparams = pack_params(master, H_v, H_a)

        fwd = jax.jit(lambda vi, ai: multimodal_lie_detector_v2(vi, ai, kparams, stub))
        logits = jax.block_until_ready(fwd(video_inputs, audio_inputs))
        assert logits.shape == (B, N_CLASSES)

        # correctness checks
        v = video_backbone_cls_stub(video_inputs, stub["wv"])
        a = audio_backbone_stub(audio_inputs, stub["wa"])
        ref_bf16 = _ref_forward_bf16(v, a, master, H_v)   # same bf16-MXU numerics as the kernel
        ref_f32 = _ref_forward_f32(v, a, master)          # PyTorch-equivalent f32 ground truth
        assert jnp.allclose(logits, ref_bf16, atol=3e-2, rtol=3e-2), (logits, ref_bf16)
        assert jnp.allclose(logits, ref_f32, atol=1.5e-1, rtol=1.5e-1), (logits, ref_f32)

    k1, k2 = jax.random.split(jax.random.PRNGKey(0))
    # small spec-consistent widths -> combined-operand (single W1 matmul) path, padded Hd/Hd2
    build_and_check(k1, B=2, H_v=32, H_a=32)
    # 128-aligned widths -> split-W1 (no HBM concat) path + padded-Hd2 LayerNorm masking
    build_and_check(k2, B=4, H_v=128, H_a=128)

    print("KERNEL_OK")
</pallas_src>

<mosaic_0001>
module attributes {stable_mosaic.version = 11 : i64} {
  func.func @kernel(%arg0: i32, %arg1: memref<16x64xbf16, #tpu.memory_space<vmem>>, %arg2: memref<64x128xbf16, #tpu.memory_space<vmem>>, %arg3: memref<128x128xbf16, #tpu.memory_space<vmem>>, %arg4: memref<128x128xbf16, #tpu.memory_space<vmem>>, %arg5: memref<8x128xf32, #tpu.memory_space<vmem>>, %arg6: memref<16x128xbf16, #tpu.memory_space<vmem>>) attributes {dimension_semantics = [#tpu.dimension_semantics<parallel>], iteration_bounds = array<i64: 1>, scalar_prefetch = 0 : i64, scratch_operands = 0 : i64, tpu.core_type = #tpu.core_type<tc>, window_params = [{transform_indices = @transform_0, window_bounds = array<i64: 16, 64>}, {pipeline_mode = #tpu.pipeline_mode<synchronous>, transform_indices = @transform_1, window_bounds = array<i64: 64, 128>}, {pipeline_mode = #tpu.pipeline_mode<synchronous>, transform_indices = @transform_2, window_bounds = array<i64: 128, 128>}, {pipeline_mode = #tpu.pipeline_mode<synchronous>, transform_indices = @transform_3, window_bounds = array<i64: 128, 128>}, {pipeline_mode = #tpu.pipeline_mode<synchronous>, transform_indices = @transform_4, window_bounds = array<i64: 8, 128>}, {transform_indices = @transform_5, window_bounds = array<i64: 16, 128>}]} {
    %c0 = arith.constant 0 : index
    %c0_0 = arith.constant 0 : index
    %0 = vector.load %arg5[%c0, %c0_0] : memref<8x128xf32, #tpu.memory_space<vmem>>, vector<8x128xf32>
    %1 = vector.extract_strided_slice %0 {offsets = [0, 0], sizes = [1, 128], strides = [1, 1]} : vector<8x128xf32> to vector<1x128xf32>
    %2 = vector.extract_strided_slice %0 {offsets = [1, 0], sizes = [1, 128], strides = [1, 1]} : vector<8x128xf32> to vector<1x128xf32>
    %3 = vector.extract_strided_slice %0 {offsets = [2, 0], sizes = [1, 128], strides = [1, 1]} : vector<8x128xf32> to vector<1x128xf32>
    %4 = vector.extract_strided_slice %0 {offsets = [3, 0], sizes = [1, 128], strides = [1, 1]} : vector<8x128xf32> to vector<1x128xf32>
    %5 = vector.extract_strided_slice %0 {offsets = [4, 0], sizes = [1, 128], strides = [1, 1]} : vector<8x128xf32> to vector<1x128xf32>
    %6 = vector.extract_strided_slice %0 {offsets = [5, 0], sizes = [1, 128], strides = [1, 1]} : vector<8x128xf32> to vector<1x128xf32>
    %7 = vector.extract_strided_slice %0 {offsets = [6, 0], sizes = [1, 128], strides = [1, 1]} : vector<8x128xf32> to vector<1x128xf32>
    %c0_1 = arith.constant 0 : index
    %c0_2 = arith.constant 0 : index
    %8 = vector.load %arg1[%c0_1, %c0_2] : memref<16x64xbf16, #tpu.memory_space<vmem>>, vector<16x64xbf16>
    %c0_3 = arith.constant 0 : index
    %c0_4 = arith.constant 0 : index
    %9 = vector.load %arg2[%c0_3, %c0_4] : memref<64x128xbf16, #tpu.memory_space<vmem>>, vector<64x128xbf16>
    %cst = arith.constant dense<0.000000e+00> : vector<16x128xf32>
    %10 = tpu.matmul %8, %9, %cst {dimension_numbers = #tpu.dot_dimension_numbers<[1], [0], [0], [1], [0, 0, 1, 1], [], []>} : vector<16x64xbf16>, vector<64x128xbf16>, vector<16x128xf32> -> vector<16x128xf32>
    %11 = vector.broadcast %1 : vector<1x128xf32> to vector<16x128xf32>
    %12 = arith.addf %10, %11 : vector<16x128xf32>
    %cst_5 = arith.constant dense<0.000000e+00> : vector<16xf32>
    %13 = vector.multi_reduction <add>, %12, %cst_5 [1] : vector<16x128xf32> to vector<16xf32>
    %14 = vector.shape_cast %13 : vector<16xf32> to vector<16x1xf32>
    %cst_6 = arith.constant 3.125000e-02 : f32
    %15 = vector.broadcast %cst_6 : f32 to vector<16x1xf32>
    %16 = arith.mulf %14, %15 : vector<16x1xf32>
    %17 = vector.broadcast %16 : vector<16x1xf32> to vector<16x128xf32>
    %18 = arith.subf %12, %17 : vector<16x128xf32>
    %19 = tpu.iota {dimensions = array<i32: 1>} : vector<1x128xi32>
    %c32_i32 = arith.constant 32 : i32
    %20 = vector.broadcast %c32_i32 : i32 to vector<1x128xi32>
    %21 = arith.cmpi slt, %19, %20 : vector<1x128xi32>
    %22 = arith.mulf %18, %18 : vector<16x128xf32>
    %cst_7 = arith.constant 0.000000e+00 : f32
    %23 = vector.shape_cast %21 : vector<1x128xi1> to vector<1x128xi1>
    %24 = vector.broadcast %23 : vector<1x128xi1> to vector<16x128xi1>
    %25 = vector.broadcast %cst_7 : f32 to vector<16x128xf32>
    %26 = arith.select %24, %22, %25 : vector<16x128xi1>, vector<16x128xf32>
    %cst_8 = arith.constant dense<0.000000e+00> : vector<16xf32>
    %27 = vector.multi_reduction <add>, %26, %cst_8 [1] : vector<16x128xf32> to vector<16xf32>
    %28 = vector.shape_cast %27 : vector<16xf32> to vector<16x1xf32>
    %cst_9 = arith.constant 3.125000e-02 : f32
    %29 = vector.broadcast %cst_9 : f32 to vector<16x1xf32>
    %30 = arith.mulf %28, %29 : vector<16x1xf32>
    %cst_10 = arith.constant 9.99999974E-6 : f32
    %31 = vector.broadcast %cst_10 : f32 to vector<16x1xf32>
    %32 = arith.addf %30, %31 : vector<16x1xf32>
    %33 = math.rsqrt %32 : vector<16x1xf32>
    %34 = vector.broadcast %33 : vector<16x1xf32> to vector<16x128xf32>
    %35 = vector.broadcast %2 : vector<1x128xf32> to vector<16x128xf32>
    %36 = arith.mulf %34, %35 : vector<16x128xf32>
    %37 = arith.mulf %18, %36 : vector<16x128xf32>
    %38 = vector.broadcast %3 : vector<1x128xf32> to vector<16x128xf32>
    %39 = arith.addf %37, %38 : vector<16x128xf32>
    %cst_11 = arith.constant 0.000000e+00 : f32
    %40 = vector.broadcast %cst_11 : f32 to vector<16x128xf32>
    %41 = arith.maximumf %39, %40 : vector<16x128xf32>
    %42 = arith.truncf %41 : vector<16x128xf32> to vector<16x128xbf16>
    %c0_12 = arith.constant 0 : index
    %c0_13 = arith.constant 0 : index
    %43 = vector.load %arg3[%c0_12, %c0_13] : memref<128x128xbf16, #tpu.memory_space<vmem>>, vector<128x128xbf16>
    %cst_14 = arith.constant dense<0.000000e+00> : vector<16x128xf32>
    %44 = tpu.matmul %42, %43, %cst_14 {dimension_numbers = #tpu.dot_dimension_numbers<[1], [0], [0], [1], [0, 0, 1, 1], [], []>} : vector<16x128xbf16>, vector<128x128xbf16>, vector<16x128xf32> -> vector<16x128xf32>
    %45 = vector.broadcast %4 : vector<1x128xf32> to vector<16x128xf32>
    %46 = arith.addf %44, %45 : vector<16x128xf32>
    %cst_15 = arith.constant dense<0.000000e+00> : vector<16xf32>
    %47 = vector.multi_reduction <add>, %46, %cst_15 [1] : vector<16x128xf32> to vector<16xf32>
    %48 = vector.shape_cast %47 : vector<16xf32> to vector<16x1xf32>
    %cst_16 = arith.constant 6.250000e-02 : f32
    %49 = vector.broadcast %cst_16 : f32 to vector<16x1xf32>
    %50 = arith.mulf %48, %49 : vector<16x1xf32>
    %51 = vector.broadcast %50 : vector<16x1xf32> to vector<16x128xf32>
    %52 = arith.subf %46, %51 : vector<16x128xf32>
    %53 = tpu.iota {dimensions = array<i32: 1>} : vector<1x128xi32>
    %c16_i32 = arith.constant 16 : i32
    %54 = vector.broadcast %c16_i32 : i32 to vector<1x128xi32>
    %55 = arith.cmpi slt, %53, %54 : vector<1x128xi32>
    %56 = arith.mulf %52, %52 : vector<16x128xf32>
    %cst_17 = arith.constant 0.000000e+00 : f32
    %57 = vector.shape_cast %55 : vector<1x128xi1> to vector<1x128xi1>
    %58 = vector.broadcast %57 : vector<1x128xi1> to vector<16x128xi1>
    %59 = vector.broadcast %cst_17 : f32 to vector<16x128xf32>
    %60 = arith.select %58, %56, %59 : vector<16x128xi1>, vector<16x128xf32>
    %cst_18 = arith.constant dense<0.000000e+00> : vector<16xf32>
    %61 = vector.multi_reduction <add>, %60, %cst_18 [1] : vector<16x128xf32> to vector<16xf32>
    %62 = vector.shape_cast %61 : vector<16xf32> to vector<16x1xf32>
    %cst_19 = arith.constant 6.250000e-02 : f32
    %63 = vector.broadcast %cst_19 : f32 to vector<16x1xf32>
    %64 = arith.mulf %62, %63 : vector<16x1xf32>
    %cst_20 = arith.constant 9.99999974E-6 : f32
    %65 = vector.broadcast %cst_20 : f32 to vector<16x1xf32>
    %66 = arith.addf %64, %65 : vector<16x1xf32>
    %67 = math.rsqrt %66 : vector<16x1xf32>
    %68 = vector.broadcast %67 : vector<16x1xf32> to vector<16x128xf32>
    %69 = vector.broadcast %5 : vector<1x128xf32> to vector<16x128xf32>
    %70 = arith.mulf %68, %69 : vector<16x128xf32>
    %71 = arith.mulf %52, %70 : vector<16x128xf32>
    %72 = vector.broadcast %6 : vector<1x128xf32> to vector<16x128xf32>
    %73 = arith.addf %71, %72 : vector<16x128xf32>
    %cst_21 = arith.constant 0.000000e+00 : f32
    %74 = vector.broadcast %cst_21 : f32 to vector<16x128xf32>
    %75 = arith.maximumf %73, %74 : vector<16x128xf32>
    %76 = arith.truncf %75 : vector<16x128xf32> to vector<16x128xbf16>
    %c0_22 = arith.constant 0 : index
    %c0_23 = arith.constant 0 : index
    %77 = vector.load %arg4[%c0_22, %c0_23] : memref<128x128xbf16, #tpu.memory_space<vmem>>, vector<128x128xbf16>
    %cst_24 = arith.constant dense<0.000000e+00> : vector<16x128xf32>
    %78 = tpu.matmul %76, %77, %cst_24 {dimension_numbers = #tpu.dot_dimension_numbers<[1], [0], [0], [1], [0, 0, 1, 1], [], []>} : vector<16x128xbf16>, vector<128x128xbf16>, vector<16x128xf32> -> vector<16x128xf32>
    %79 = vector.broadcast %7 : vector<1x128xf32> to vector<16x128xf32>
    %80 = arith.addf %78, %79 : vector<16x128xf32>
    %81 = arith.truncf %80 : vector<16x128xf32> to vector<16x128xbf16>
    %c0_25 = arith.constant 0 : index
    %c0_26 = arith.constant 0 : index
    %82 = vector.load %arg6[%c0_25, %c0_26] : memref<16x128xbf16, #tpu.memory_space<vmem>>, vector<16x128xbf16>
    tpu.vector_store %arg6[%c0_25, %c0_26], %81 {strides = array<i32>} : memref<16x128xbf16, #tpu.memory_space<vmem>>, vector<16x128xbf16>,
    return
  }
  func.func @transform_0(%arg0: i32) -> (i32, i32) {
    %c0_i32 = arith.constant 0 : i32
    %c0_i32_0 = arith.constant 0 : i32
    return %arg0, %c0_i32 : i32, i32
  }
  func.func @transform_1(%arg0: i32) -> (i32, i32) {
    %c0_i32 = arith.constant 0 : i32
    %c0_i32_0 = arith.constant 0 : i32
    %c0_i32_1 = arith.constant 0 : i32
    return %c0_i32, %c0_i32_0 : i32, i32
  }
  func.func @transform_2(%arg0: i32) -> (i32, i32) {
    %c0_i32 = arith.constant 0 : i32
    %c0_i32_0 = arith.constant 0 : i32
    %c0_i32_1 = arith.constant 0 : i32
    return %c0_i32, %c0_i32_0 : i32, i32
  }
  func.func @transform_3(%arg0: i32) -> (i32, i32) {
    %c0_i32 = arith.constant 0 : i32
    %c0_i32_0 = arith.constant 0 : i32
    %c0_i32_1 = arith.constant 0 : i32
    return %c0_i32, %c0_i32_0 : i32, i32
  }
  func.func @transform_4(%arg0: i32) -> (i32, i32) {
    %c0_i32 = arith.constant 0 : i32
    %c0_i32_0 = arith.constant 0 : i32
    %c0_i32_1 = arith.constant 0 : i32
    return %c0_i32, %c0_i32_0 : i32, i32
  }
  func.func @transform_5(%arg0: i32) -> (i32, i32) {
    %c0_i32 = arith.constant 0 : i32
    %c0_i32_0 = arith.constant 0 : i32
    return %arg0, %c0_i32 : i32, i32
  }
}

</mosaic_0001>

<bundles_post_ra>
// kernel: _lambda_.1
= control target key start
LH: loop header
LB: loop body
LE: loop exit
PB: predicated region body
PF: predicated region fallthrough
CT: control target
= control target key end

     0   :  { %v710_v1 = vmov 0.0   ;;  %vm711_vm0 = vmmov 0   ;;  %v38_v3 = vlaneseq  ;;  %v712_v14 = vmov 1966171168   ;;  %s891_s0 = inlined_call_operand.vmem [shape: bf16[2,64], index: 0, kind: input, shape index: {}]   ;;  %s892_s1 = inlined_call_operand.vmem [shape: bf16[64,128], index: 1, kind: input, shape index: {}]   ;;  %s893_s2 = inlined_call_operand.vmem [shape: bf16[128,128], index: 2, kind: input, shape index: {}]   ;;  %s894_s3 = inlined_call_operand.vmem [shape: bf16[128,128], index: 3, kind: input, shape index: {}]   ;;  %s895_s4 = inlined_call_operand.vmem [shape: f32[8,128], index: 4, kind: input, shape index: {}]   ;;  %s896_s5 = inlined_call_operand.vmem [shape: bf16[2,128], index: 5, kind: output, shape index: {}]  }
   0x1   :  { %v682_v0 = vld [vmem:[%s892_s1] sm:$0xff]   ;;  %627 = vmatprep.subr.bf16.mxu0 %v710_v1  ;;  %639 = vmatprep.subr.bf16.mxu1 %v710_v1  ;;  %v683_v2 = vld [vmem:[%s892_s1 + $0x8] sm:$0xff]   ;;  %v684_v4 = vld [vmem:[%s892_s1 + $0x10] sm:$0xff]   ;;  %v55_v15 = vunpack.c.l.s4 %v712_v14  ;;  %vm123_vm1 = vcmask 523264  }
   0x2   :  { %628 = vmatpush3.bf16.msra.mxu0 %v682_v0  ;;  %635 = vmatprep.mubr.msk.bf16.mxu0 %vm711_vm0, %v710_v1  ;;  %v22_v5 = vld [vmem:[%s891_s0] sm:$0x1]  ;;  %v23_v6 = vld [vmem:[%s891_s0 + $0x1] sm:$0x1]  ;;  %v24_v7 = vld [vmem:[%s891_s0 + $0x2] sm:$0x1] }
   0x3   :  { %629 = vmatprep.subr.bf16.mxu0 %v710_v1  ;;  %655 = vmatprep.mubr.msk.bf16.mxu1 %vm711_vm0, %v710_v1  ;;  %v25_v8 = vld [vmem:[%s891_s0 + $0x3] sm:$0x1]  ;;  %v26_v9 = vld [vmem:[%s891_s0 + $0x4] sm:$0x1]  ;;  %v27_v10 = vld [vmem:[%s891_s0 + $0x5] sm:$0x1]  ;;  %v50_v17 = vcombine.low %v22_v5, %v23_v6  ;;  %v56_v21 = vunpack.c.0.s8 %v55_v15 }
   0x4   :  { %v28_v11 = vld [vmem:[%s891_s0 + $0x6] sm:$0x1]  ;;  %v29_v12 = vld [vmem:[%s891_s0 + $0x7] sm:$0x1]  ;;  %v784_v13 = vshrl.u32 %v38_v3, 7  ;;  %v685_v16 = vld [vmem:[%s892_s1 + $0x18] sm:$0xff]   ;;  %v51_v18 = vcombine.low %v24_v7, %v25_v8  ;;  %v52_v19 = vcombine.low %v26_v9, %v27_v10 }
   0x5   :  { %v53_v20 = vcombine.low %v28_v11, %v29_v12  ;;  %v806_v33 = vld [vmem:[%s895_s4] sm:$0xff]  ;;  %v813_v43 = vand.u32 127, %v38_v3  ;;  %v687_v53 = vld [vmem:[%s893_s2 + $0x8] sm:$0xff]   ;;  %v688_v54 = vld [vmem:[%s893_s2 + $0x10] sm:$0xff]  }
   0x6   :  { %630 = vmatpush3.bf16.msra.mxu0 %v683_v2  ;;  %v791_v22 = vsub.s32 %v56_v21, %v784_v13  ;;  %v40_v32 = vsub.s32 0, %v784_v13  ;;  %v686_v41 = vld [vmem:[%s893_s2] sm:$0xff]   ;;  %v689_v55 = vld [vmem:[%s893_s2 + $0x18] sm:$0xff]   ;;  %v691_v57 = vld [vmem:[%s893_s2 + $0x28] sm:$0xff]   ;;  %v197_v3 = vsub.s32 1, %v784_v13  ;;  %v205_v5 = vsub.s32 2, %v784_v13 }
   0x7   :  { %631 = vmatprep.subr.bf16.mxu0 %v710_v1  ;;  %640 = vmatpush3.bf16.msra.mxu1 %v686_v41  ;;  %vm178_vm2 = vcmp.lt.s32.totalorder %v813_v43, 32  ;;  %v690_v56 = vld [vmem:[%s893_s2 + $0x20] sm:$0xff]   ;;  %v692_v58 = vld [vmem:[%s893_s2 + $0x30] sm:$0xff]   ;;  %v693_v59 = vld [vmem:[%s893_s2 + $0x38] sm:$0xff]   ;;  %vm329_vm3 = vcmp.lt.s32.totalorder %v813_v43, 16 }
   0x8   :  { %v60_v23 = vrot.slane %v50_v17, %v791_v22  ;;  %v67_v24 = vrot.slane %v51_v18, %v791_v22  ;;  %v74_v25 = vrot.slane %v52_v19, %v791_v22  ;;  %v81_v26 = vrot.slane %v53_v20, %v791_v22  ;;  %641 = vmatprep.subr.bf16.mxu1 %v710_v1  ;;  %v696_v41 = vld [vmem:[%s894_s3 + $0x10] sm:$0xff]   ;;  %v698_v43 = vld [vmem:[%s894_s3 + $0x20] sm:$0xff]  }
   0x9   :  { %v41_v34 = vrot.slane %v806_v33, %v40_v32  ;;  %v206_v9 = vrot.slane %v806_v33, %v205_v5  ;;  %v230_v19 = vsub.s32 3, %v784_v13 }
   0xa   :  { %632 = vmatpush3.bf16.msra.mxu0 %v684_v4  ;;  %v82_v27 = vcombine.low %v60_v23, %v67_v24  ;;  %v83_v28 = vcombine.low %v74_v25, %v81_v26  ;;  %v198_v4 = vrot.slane %v806_v33, %v197_v3 }
   0xb   :  { %633 = vmatprep.subr.bf16.mxu0 %v710_v1  ;;  %642 = vmatpush3.bf16.msra.mxu1 %v687_v53  ;;  %v231_v20 = vrot.slane %v806_v33, %v230_v19  ;;  %v348_v53 = vsub.s32 4, %v784_v13 }
   0xc   :  { %v90_v29 = vrot.slane %v82_v27, %v791_v22  ;;  %v97_v30 = vrot.slane %v83_v28, %v791_v22  ;;  %643 = vmatprep.subr.bf16.mxu1 %v710_v1  ;;  %v694_v28 = vld [vmem:[%s894_s3] sm:$0xff]  }
   0xe   :  { %634 = vmatpush3.bf16.msra.mxu0 %v685_v16  ;;  %v98_v31 = vcombine.low %v90_v29, %v97_v30 }
   0xf   :  { %659 = vmatprep.subr.bf16.mxu0 %v710_v1  ;;  %644 = vmatpush3.bf16.msra.mxu1 %v688_v54  ;;  %v349_v54 = vrot.slane %v806_v33, %v348_v53 }
  0x10   :  { %645 = vmatprep.subr.bf16.mxu1 %v710_v1 }
  0x11   :  { %636 = vmatmul.mubr.msk.bf16.vlgmr.msra.gmra.mrb[0].mxu0 %vm123_vm1, %v98_v31 }
  0x12   :  { %675 = vmatprep.mubr.msk.bf16.mxu0 %vm711_vm0, %v710_v1  ;;  %660 = vmatpush3.bf16.msra.mxu0 %v694_v28 }
  0x13   :  { %646 = vmatpush3.bf16.msra.mxu1 %v689_v55  ;;  %661 = vmatprep.subr.bf16.mxu0 %v710_v1  ;;  %v356_v55 = vsub.s32 5, %v784_v13 }
  0x14   :  { %647 = vmatprep.subr.bf16.mxu1 %v710_v1 }
  0x17   :  { %648 = vmatpush3.bf16.msra.mxu1 %v690_v56 }
  0x18   :  { %649 = vmatprep.subr.bf16.mxu1 %v710_v1 }
  0x1b   :  { %650 = vmatpush3.bf16.msra.mxu1 %v691_v57 }
  0x1c   :  { %651 = vmatprep.subr.bf16.mxu1 %v710_v1 }
  0x1f   :  { %652 = vmatpush3.bf16.msra.mxu1 %v692_v58  ;;  %v357_v58 = vrot.slane %v806_v33, %v356_v55 }
  0x20   :  { %653 = vmatprep.subr.bf16.mxu1 %v710_v1 }
  0x23   :  { %654 = vmatpush3.bf16.msra.mxu1 %v693_v59 }
  0xe4   :  { %v161_v35 = vpop.f32.mrb[0].mxu0 }
  0xe5   :  { %v162_v36 = vadd.f32 %v161_v35, %v41_v34  ;;  %v637_v37 = vpop.f32.mrb[1].mxu0 }
  0xe6   :  { %v164_v38 = vpop.f32.mrb[2].mxu0 }
  0xe7   :  { %v638_v39 = vpop.f32.mrb[3].mxu0  ;;  %168 = vadd.xlane.f32.xlu0 %v162_v36  ;;  %v165_v40 = vadd.f32 %v164_v38, %v41_v34 }
  0xeb   :  { %170 = vadd.xlane.f32.xlu0 %v165_v40 }
 0x174   :  { %v169_v42 = vpop.xlane.xlu0 %168 }
 0x175   :  { %v172_v44 = vmul.f32 0.03125, %v169_v42  ;;  %v697_v42 = vld [vmem:[%s894_s3 + $0x18] sm:$0xff]  }
 0x177   :  { %v174_v45 = vsub.f32 %v162_v36, %v172_v44  ;;  %v699_v44 = vld [vmem:[%s894_s3 + $0x28] sm:$0xff]  }
 0x178   :  { %v171_v46 = vpop.xlane.xlu0 %170 }
 0x179   :  { %v173_v47 = vmul.f32 0.03125, %v171_v46  ;;  %v179_v48 = vmul.f32 %v174_v45, %v174_v45  ;;  %v701_v46 = vld [vmem:[%s894_s3 + $0x38] sm:$0xff]  }
 0x17b   :  { %v175_v49 = vsub.f32 %v165_v40, %v173_v47  ;;  %v183_v50 = vsel %vm178_vm2, %v179_v48, 0.0  ;;  %v695_v40 = vld [vmem:[%s894_s3 + $0x8] sm:$0xff]  }
 0x17c   :  { %185 = vadd.xlane.f32.xlu1 %v183_v50  ;;  %662 = vmatpush3.bf16.msra.mxu0 %v695_v40 }
 0x17d   :  { %v180_v51 = vmul.f32 %v175_v49, %v175_v49  ;;  %663 = vmatprep.subr.bf16.mxu0 %v710_v1 }
 0x17f   :  { %v184_v52 = vsel %vm178_vm2, %v180_v51, 0.0 }
 0x180   :  { %187 = vadd.xlane.f32.xlu1 %v184_v52  ;;  %664 = vmatpush3.bf16.msra.mxu0 %v696_v41 }
 0x181   :  { %665 = vmatprep.subr.bf16.mxu0 %v710_v1 }
 0x184   :  { %666 = vmatpush3.bf16.msra.mxu0 %v697_v42 }
 0x185   :  { %667 = vmatprep.subr.bf16.mxu0 %v710_v1 }
 0x188   :  { %668 = vmatpush3.bf16.msra.mxu0 %v698_v43 }
 0x189   :  { %669 = vmatprep.subr.bf16.mxu0 %v710_v1 }
 0x18c   :  { %670 = vmatpush3.bf16.msra.mxu0 %v699_v44 }
 0x18d   :  { %671 = vmatprep.subr.bf16.mxu0 %v710_v1 }
 0x209   :  { %v186_v60 = vpop.xlane.xlu1 %185 }
 0x20a   :  { %v189_v61 = vmul.f32 0.03125, %v186_v60 }
 0x20c   :  { %v191_v62 = vadd.f32 1e-05, %v189_v61 }
 0x20d   :  { %v188_v63 = vpop.xlane.xlu1 %187 }
 0x20e   :  { %702 = vrsqrt.f32 %v191_v62  ;;  %v190_v0 = vmul.f32 0.03125, %v188_v63 }
 0x210   :  { %v192_v2 = vadd.f32 1e-05, %v190_v0 }
 0x212   :  { %704 = vrsqrt.f32 %v192_v2 }
 0x218   :  { %v703_v6 = vpop.eup %702 }
 0x219   :  { %v199_v7 = vmul.f32 %v703_v6, %v198_v4 }
 0x21b   :  { %v201_v8 = vmul.f32 %v199_v7, %v174_v45  ;;  %v700_v45 = vld [vmem:[%s894_s3 + $0x30] sm:$0xff]  }
 0x21c   :  { %v705_v10 = vpop.eup %704  ;;  %672 = vmatpush3.bf16.msra.mxu0 %v700_v45 }
 0x21d   :  { %v200_v11 = vmul.f32 %v705_v10, %v198_v4  ;;  %v207_v14 = vadd.f32 %v206_v9, %v201_v8  ;;  %673 = vmatprep.subr.bf16.mxu0 %v710_v1  ;;  %v381_v4 = vsub.s32 6, %v784_v13 }
 0x21f   :  { %v202_v12 = vmul.f32 %v200_v11, %v175_v49  ;;  %v209_v16 = vmax.f32 %v207_v14, 0.0  ;;  %v382_v5 = vrot.slane %v806_v33, %v381_v4 }
 0x220   :  { %674 = vmatpush3.bf16.msra.mxu0 %v701_v46 }
 0x221   :  { %v208_v15 = vadd.f32 %v206_v9, %v202_v12 }
 0x223   :  { %v210_v17 = vmax.f32 %v208_v15, 0.0 }
 0x225   :  { %v211_v18 = vpack.c.bf16 %v210_v17, %v209_v16 }
 0x227   :  { %656 = vmatmul.mubr.bf16.vlgmr.msra.gmra.mrb[0].mxu1 %v211_v18 }
 0x2fa   :  { %v314_v21 = vpop.f32.mrb[0].mxu1 }
 0x2fb   :  { %v315_v23 = vadd.f32 %v314_v21, %v231_v20  ;;  %v657_v24 = vpop.f32.mrb[1].mxu1 }
 0x2fc   :  { %v317_v25 = vpop.f32.mrb[2].mxu1 }
 0x2fd   :  { %v318_v26 = vadd.f32 %v317_v25, %v231_v20  ;;  %321 = vadd.xlane.f32.xlu0 %v315_v23  ;;  %v658_v27 = vpop.f32.mrb[3].mxu1 }
 0x2ff   :  { %323 = vadd.xlane.f32.xlu1 %v318_v26 }
 0x38a   :  { %v322_v29 = vpop.xlane.xlu0 %321 }
 0x38b   :  { %v325_v30 = vmul.f32 0.0625, %v322_v29 }
 0x38c   :  { %v324_v31 = vpop.xlane.xlu1 %323 }
 0x38d   :  { %v327_v32 = vsub.f32 %v315_v23, %v325_v30  ;;  %v326_v34 = vmul.f32 0.0625, %v324_v31 }
 0x38f   :  { %v328_v35 = vsub.f32 %v318_v26, %v326_v34  ;;  %v330_v36 = vmul.f32 %v327_v32, %v327_v32 }
 0x391   :  { %v334_v37 = vsel %vm329_vm3, %v330_v36, 0.0  ;;  %v331_v38 = vmul.f32 %v328_v35, %v328_v35 }
 0x392   :  { %336 = vadd.xlane.f32.xlu0 %v334_v37 }
 0x393   :  { %v335_v39 = vsel %vm329_vm3, %v331_v38, 0.0 }
 0x394   :  { %338 = vadd.xlane.f32.xlu1 %v335_v39 }
 0x41f   :  { %v337_v47 = vpop.xlane.xlu0 %336 }
 0x420   :  { %v340_v48 = vmul.f32 0.0625, %v337_v47 }
 0x421   :  { %v339_v49 = vpop.xlane.xlu1 %338 }
 0x422   :  { %v342_v50 = vadd.f32 1e-05, %v340_v48  ;;  %v341_v51 = vmul.f32 0.0625, %v339_v49 }
 0x424   :  { %706 = vrsqrt.f32 %v342_v50  ;;  %v343_v52 = vadd.f32 1e-05, %v341_v51 }
 0x426   :  { %708 = vrsqrt.f32 %v343_v52 }
 0x42e   :  { %v707_v56 = vpop.eup %706 }
 0x42f   :  { %v350_v57 = vmul.f32 %v707_v56, %v349_v54 }
 0x430   :  { %v709_v1 = vpop.eup %708 }
 0x431   :  { %v351_v59 = vmul.f32 %v709_v1, %v349_v54  ;;  %v352_v60 = vmul.f32 %v350_v57, %v327_v32 }
 0x433   :  { %v353_v61 = vmul.f32 %v351_v59, %v328_v35  ;;  %v358_v62 = vadd.f32 %v357_v58, %v352_v60 }
 0x435   :  { %v359_v63 = vadd.f32 %v357_v58, %v353_v61  ;;  %v360_v0 = vmax.f32 %v358_v62, 0.0 }
 0x437   :  { %v361_v2 = vmax.f32 %v359_v63, 0.0 }
 0x439   :  { %v362_v3 = vpack.c.bf16 %v361_v2, %v360_v0 }
 0x43b   :  { %676 = vmatmul.mubr.bf16.vlgmr.msra.gmra.mrb[4].mxu0 %v362_v3 }
 0x50e   :  { %v465_v6 = vpop.f32.mrb[4].mxu0 }
 0x50f   :  { %v677_v7 = vpop.f32.mrb[5].mxu0  ;;  %v466_v9 = vadd.f32 %v465_v6, %v382_v5 }
 0x510   :  { %v468_v8 = vpop.f32.mrb[6].mxu0 }
 0x511   :  { %v469_v10 = vadd.f32 %v468_v8, %v382_v5  ;;  %v678_v11 = vpop.f32.mrb[7].mxu0 }
 0x513   :  { %v472_v12 = vpack.c.bf16 %v469_v10, %v466_v9 }
 0x515   :  { %v481_v14 = vrot.slane %v472_v12, %v791_v22 }
 0x517   :  { %600 = vst.sshfl [vmem:[#allocation2] sm:$0x1 pattern:$0x73625140] %v481_v14 }
 0x51e   :  { %v556_v15 = vld [vmem:[#allocation2] sm:$0x1] }
 0x51f   :  { %557 = vst [vmem:[%s896_s5] sm:$0x1] %v556_v15 }

</bundles_post_ra>
